<compile_context>
chip_gen: v6e
topology: v6e:2x2x1
jax: 0.10.0
libtpu: 0.0.40
codegen_flags: <defaults>
</compile_context>

<pallas_src>
import functools
import math

import jax
import jax.numpy as jnp
import numpy as np
from jax.experimental import pallas as pl
from jax.experimental.pallas import tpu as pltpu

_EPS = 1e-15     # stability offset from the original PyTorch code
_TINY = 1e-30    # guard so tanh(scn)/scn never hits 0/0


# ----------------------------------------------------------------------------
# Kernels
# ----------------------------------------------------------------------------
def _exp_zero_kernel_flat(x_ref, o_ref, *, c: float):
    """k == 1: the tile's last dim is the full feature dim (XLU row reduce)."""
    xf = x_ref[...].astype(jnp.float32) + jnp.float32(_EPS)           # (tm, d)
    norm = jnp.sqrt(jnp.sum(xf * xf, axis=-1, keepdims=True))         # (tm, 1)
    scn = jnp.maximum(jnp.float32(math.sqrt(c)) * norm, jnp.float32(_TINY))
    scale = jnp.tanh(scn) / scn                                       # (tm, 1)
    o_ref[...] = (scale * xf).astype(o_ref.dtype)


def _exp_zero_kernel_folded(s_ref, st_ref, x_ref, o_ref, *, c: float, precision):
    """k > 1: each physical row folds k logical rows of width d along lanes.

    s_ref  : (cols, k) 0/1 block-diagonal segment matrix (resident constant).
    st_ref : (k, cols) transpose of s_ref (resident constant; avoids per-step
             XLU transpose).
    Segmented sum-of-squares / broadcast-back run on the otherwise-idle MXU.
    """
    xf = x_ref[...].astype(jnp.float32) + jnp.float32(_EPS)           # (tm, cols)
    seg_sq = jnp.dot(xf * xf, s_ref[...],
                     preferred_element_type=jnp.float32,
                     precision=precision)                             # (tm, k)
    norm = jnp.sqrt(seg_sq)
    scn = jnp.maximum(jnp.float32(math.sqrt(c)) * norm, jnp.float32(_TINY))
    scale = jnp.tanh(scn) / scn                                       # (tm, k)
    scale_full = jnp.dot(scale, st_ref[...],
                         preferred_element_type=jnp.float32,
                         precision=precision)                         # (tm, cols)
    # Fresh reload: keep the f32 copy of x out of the live range of both dots.
    xf2 = x_ref[...].astype(jnp.float32) + jnp.float32(_EPS)
    o_ref[...] = (scale_full * xf2).astype(o_ref.dtype)


# ----------------------------------------------------------------------------
# Wrapper
# ----------------------------------------------------------------------------
def _round_up(v: int, m: int) -> int:
    return ((v + m - 1) // m) * m


def _segment_matrices(d: int, k: int):
    """Block-diagonal 0/1 matrix S[j, s] = 1 iff lane j belongs to segment s."""
    cols = k * d
    col = np.arange(cols)[:, None]
    seg = np.arange(k)[None, :]
    s = ((col >= seg * d) & (col < (seg + 1) * d)).astype(np.float32)  # (cols, k)
    return jnp.asarray(s), jnp.asarray(np.ascontiguousarray(s.T))


def _exp_zero_2d(x2: jax.Array, c: float, d: int, k: int,
                 target_block_bytes: int) -> jax.Array:
    """Run the Pallas kernel on a (rows, cols) array, cols = k*d."""
    rows, cols = x2.shape
    dtype = x2.dtype
    itemsize = jnp.dtype(dtype).itemsize
    sub = max(8, 32 // itemsize)            # sublane granularity: 8 f32, 16 bf16
    row_bytes = cols * itemsize

    # --- Row-tile sizing ----------------------------------------------------
    # VMEM-budget driven: 2x double-buffered in+out tiles plus ~3 full-tile
    # f32 temporaries must fit comfortably everywhere (v7x: 64 MiB per TC).
    vmem_budget = 28 << 20
    per_row_vmem = cols * (4 * itemsize + 3 * 4)
    tm = min(max(1, vmem_budget // per_row_vmem),
             max(1, target_block_bytes // row_bytes))
    tm = max(sub, (tm // sub) * sub)
    # Never collapse to a single grid step when rows allow >= 2 blocks:
    # keeps DMA/compute pipelining for mid-size inputs.
    min_grid = 2
    tm = min(tm, _round_up(pl.cdiv(rows, min_grid), sub))
    if tm >= rows:
        tm = rows                            # full-dim block is always legal
    grid = (pl.cdiv(rows, tm),)              # ragged tail handled by Pallas

    # --- Explicit scoped-VMEM limit ------------------------------------------
    smat_bytes = (2 * 2 * cols * k * 4) if k > 1 else 0
    vmem_need = 4 * tm * cols * itemsize + 3 * tm * cols * 4 + smat_bytes
    vmem_limit = int(vmem_need * 1.5) + (4 << 20)
    vmem_limit = max(32 << 20, min(vmem_limit, 48 << 20))

    x_spec = pl.BlockSpec((tm, cols), lambda i: (i, 0))
    o_spec = pl.BlockSpec((tm, cols), lambda i: (i, 0))
    compiler_params = pltpu.CompilerParams(
        # TODO(synk): v7x — CORE_PARALLEL over the 2 TensorCores on this axis.
        dimension_semantics=("parallel",),
        vmem_limit_bytes=vmem_limit,
    )

    if k == 1:
        kernel = functools.partial(_exp_zero_kernel_flat, c=float(c))
        return pl.pallas_call(
            kernel,
            out_shape=jax.ShapeDtypeStruct((rows, cols), dtype),
            grid_spec=pltpu.PrefetchScalarGridSpec(
                num_scalar_prefetch=0, grid=grid,
                in_specs=[x_spec], out_specs=o_spec),
            compiler_params=compiler_params,
        )(x2)

    precision = (jax.lax.Precision.HIGHEST if dtype == jnp.float32
                 else jax.lax.Precision.DEFAULT)
    s_mat, s_mat_t = _segment_matrices(d, k)
    kernel = functools.partial(_exp_zero_kernel_folded, c=float(c),
                               precision=precision)
    # Constant index maps -> resident blocks, DMA'd once across the grid.
    s_spec = pl.BlockSpec((cols, k), lambda i: (0, 0))
    st_spec = pl.BlockSpec((k, cols), lambda i: (0, 0))
    return pl.pallas_call(
        kernel,
        out_shape=jax.ShapeDtypeStruct((rows, cols), dtype),
        grid_spec=pltpu.PrefetchScalarGridSpec(
            num_scalar_prefetch=0, grid=grid,
            in_specs=[s_spec, st_spec, x_spec], out_specs=o_spec),
        compiler_params=compiler_params,
    )(s_mat, s_mat_t, x2)


def exp_zero(
    x: jax.Array,
    c: float,
    *,
    target_block_bytes: int = 4 * 1024 * 1024,
    small_input_fallback: bool = True,
    small_input_threshold: int = 1 << 14,
) -> jax.Array:
    """Poincare exp-map at origin; norm over the last axis of `x`."""
    orig_shape = x.shape
    orig_dtype = x.dtype
    d = orig_shape[-1]
    n = math.prod(orig_shape[:-1]) if len(orig_shape) > 1 else 1

    # Tiny inputs: launch overhead dwarfs the work; plain XLA fuses this fine.
    if small_input_fallback and x.size <= small_input_threshold:
        return _exp_zero_ref(x, c).astype(orig_dtype)

    # Lane folding: if d < 128 the output tile would be lane-sparse (masked
    # vst); pack k logical rows per physical row so k*d is a multiple of 128.
    # Capped so pathological d cannot make the MXU reduction the bottleneck.
    k = 1
    if d < 128:
        kk = 128 // math.gcd(d, 128)
        if kk * d <= 1024 and kk <= 64:
            k = kk

    x2 = x.reshape(n, d)

    if k == 1:
        return _exp_zero_2d(x2, c, d, 1, target_block_bytes).reshape(orig_shape)

    n_main = (n // k) * k
    if n_main == 0:
        # Fewer rows than one fold group — reference path is cheaper.
        return _exp_zero_ref(x, c).astype(orig_dtype)

    if n_main == n:
        folded = x2.reshape(n // k, k * d)          # bitcast reshape, no copy
        out = _exp_zero_2d(folded, c, d, k, target_block_bytes)
        return out.reshape(orig_shape)

    # Ragged n: folded kernel on the first n_main rows; the tiny (< k rows)
    # remainder goes through the reference path.  No jnp.pad / prefix slice
    # around pallas_call (each of those cost a full extra HBM pass).
    main = x2[:n_main].reshape(n_main // k, k * d)
    out_main = _exp_zero_2d(main, c, d, k, target_block_bytes).reshape(n_main, d)
    out_tail = _exp_zero_ref(x2[n_main:], c).astype(orig_dtype)
    out = jnp.concatenate([out_main, out_tail], axis=0)
    return out.reshape(orig_shape)


def _exp_zero_ref(x: jax.Array, c: float) -> jax.Array:
    x = x.astype(jnp.float32) + _EPS
    norm = jnp.sqrt(jnp.sum(x * x, axis=-1, keepdims=True))
    sc = jnp.sqrt(jnp.float32(c))
    return jnp.tanh(sc * norm) / (sc * norm) * x


if __name__ == "__main__":
    key = jax.random.PRNGKey(0)
    c = 1.0  # curvature parameter of ExpZero(c)

    # Small shape consistent with the module: (batch=2, seq=8, hidden=32),
    # norm over the hidden (last) dim.  Force the Pallas path for the demo.
    x = jax.random.normal(key, (2, 8, 32), dtype=jnp.float32)
    y = jax.block_until_ready(exp_zero(x, c, small_input_fallback=False))
    y_ref = _exp_zero_ref(x, c)
    assert y.shape == x.shape and y.dtype == x.dtype
    assert jnp.allclose(y, y_ref.astype(x.dtype), atol=1e-5, rtol=1e-5)

    # Extra (still small) coverage: ragged n (main + tail split), d>=128 path,
    # multi-block grid with ragged row tail, bf16 I/O with DEFAULT precision.
    checks = [
        ((3, 37, 48), jnp.float32, {}),                               # ragged n, lane fold k=8
        ((4, 17, 256), jnp.float32, {}),                              # d >= 128, no folding
        ((1, 100, 32), jnp.float32, dict(target_block_bytes=4096)),   # multi-block + ragged tail
        ((2, 64, 32), jnp.bfloat16, {}),                              # bf16 HBM I/O
    ]
    for i, (shape, dt, kw) in enumerate(checks):
        xi = jax.random.normal(jax.random.PRNGKey(i + 1), shape, dtype=dt)
        yi = jax.block_until_ready(exp_zero(xi, c, small_input_fallback=False, **kw))
        ri = _exp_zero_ref(xi, c).astype(dt)
        tol = 1e-5 if dt == jnp.float32 else 2e-2
        assert yi.shape == xi.shape and yi.dtype == xi.dtype
        assert jnp.allclose(yi.astype(jnp.float32), ri.astype(jnp.float32),
                            atol=tol, rtol=tol), shape

    print("KERNEL_OK")
</pallas_src>

<mosaic_0001>
module attributes {stable_mosaic.version = 11 : i64} {
  func.func @_exp_zero_kernel_folded(%arg0: i32, %arg1: memref<128x4xf32, #tpu.memory_space<vmem>>, %arg2: memref<4x128xf32, #tpu.memory_space<vmem>>, %arg3: memref<4x128xf32, #tpu.memory_space<vmem>>, %arg4: memref<4x128xf32, #tpu.memory_space<vmem>>) attributes {dimension_semantics = [#tpu.dimension_semantics<parallel>], iteration_bounds = array<i64: 1>, scalar_prefetch = 0 : i64, scratch_operands = 0 : i64, tpu.core_type = #tpu.core_type<tc>, window_params = [{pipeline_mode = #tpu.pipeline_mode<synchronous>, transform_indices = @transform_0, window_bounds = array<i64: 128, 4>}, {pipeline_mode = #tpu.pipeline_mode<synchronous>, transform_indices = @transform_1, window_bounds = array<i64: 4, 128>}, {transform_indices = @transform_2, window_bounds = array<i64: 4, 128>}, {transform_indices = @transform_3, window_bounds = array<i64: 4, 128>}]} {
    %c0 = arith.constant 0 : index
    %c0_0 = arith.constant 0 : index
    %0 = vector.load %arg3[%c0, %c0_0] : memref<4x128xf32, #tpu.memory_space<vmem>>, vector<4x128xf32>
    %cst = arith.constant 1.000000e-15 : f32
    %1 = vector.broadcast %cst : f32 to vector<4x128xf32>
    %2 = arith.addf %0, %1 : vector<4x128xf32>
    %3 = arith.mulf %2, %2 : vector<4x128xf32>
    %c0_1 = arith.constant 0 : index
    %c0_2 = arith.constant 0 : index
    %4 = vector.load %arg1[%c0_1, %c0_2] : memref<128x4xf32, #tpu.memory_space<vmem>>, vector<128x4xf32>
    %cst_3 = arith.constant dense<0.000000e+00> : vector<4x4xf32>
    %5 = tpu.matmul %3, %4, %cst_3 {dimension_numbers = #tpu.dot_dimension_numbers<[1], [0], [0], [1], [0, 0, 1, 1], [], []>, precision = #tpu.contract_precision<fp32>} : vector<4x128xf32>, vector<128x4xf32>, vector<4x4xf32> -> vector<4x4xf32>
    %6 = math.sqrt %5 : vector<4x4xf32>
    %cst_4 = arith.constant 1.000000e+00 : f32
    %7 = vector.broadcast %cst_4 : f32 to vector<4x4xf32>
    %8 = arith.mulf %7, %6 : vector<4x4xf32>
    %cst_5 = arith.constant 1.000000e-30 : f32
    %9 = vector.broadcast %cst_5 : f32 to vector<4x4xf32>
    %10 = arith.maximumf %8, %9 : vector<4x4xf32>
    %11 = math.tanh %10 : vector<4x4xf32>
    %12 = arith.divf %11, %10 : vector<4x4xf32>
    %c0_6 = arith.constant 0 : index
    %c0_7 = arith.constant 0 : index
    %13 = vector.load %arg2[%c0_6, %c0_7] : memref<4x128xf32, #tpu.memory_space<vmem>>, vector<4x128xf32>
    %cst_8 = arith.constant dense<0.000000e+00> : vector<4x128xf32>
    %14 = tpu.matmul %12, %13, %cst_8 {dimension_numbers = #tpu.dot_dimension_numbers<[1], [0], [0], [1], [0, 0, 1, 1], [], []>, precision = #tpu.contract_precision<fp32>} : vector<4x4xf32>, vector<4x128xf32>, vector<4x128xf32> -> vector<4x128xf32>
    %c0_9 = arith.constant 0 : index
    %c0_10 = arith.constant 0 : index
    %15 = vector.load %arg3[%c0_9, %c0_10] : memref<4x128xf32, #tpu.memory_space<vmem>>, vector<4x128xf32>
    %cst_11 = arith.constant 1.000000e-15 : f32
    %16 = vector.broadcast %cst_11 : f32 to vector<4x128xf32>
    %17 = arith.addf %15, %16 : vector<4x128xf32>
    %18 = arith.mulf %14, %17 : vector<4x128xf32>
    %c0_12 = arith.constant 0 : index
    %c0_13 = arith.constant 0 : index
    %19 = vector.load %arg4[%c0_12, %c0_13] : memref<4x128xf32, #tpu.memory_space<vmem>>, vector<4x128xf32>
    tpu.vector_store %arg4[%c0_12, %c0_13], %18 {strides = array<i32>} : memref<4x128xf32, #tpu.memory_space<vmem>>, vector<4x128xf32>,
    return
  }
  func.func @transform_0(%arg0: i32) -> (i32, i32) {
    %c0_i32 = arith.constant 0 : i32
    %c0_i32_0 = arith.constant 0 : i32
    %c0_i32_1 = arith.constant 0 : i32
    return %c0_i32, %c0_i32_0 : i32, i32
  }
  func.func @transform_1(%arg0: i32) -> (i32, i32) {
    %c0_i32 = arith.constant 0 : i32
    %c0_i32_0 = arith.constant 0 : i32
    %c0_i32_1 = arith.constant 0 : i32
    return %c0_i32, %c0_i32_0 : i32, i32
  }
  func.func @transform_2(%arg0: i32) -> (i32, i32) {
    %c0_i32 = arith.constant 0 : i32
    %c0_i32_0 = arith.constant 0 : i32
    return %arg0, %c0_i32 : i32, i32
  }
  func.func @transform_3(%arg0: i32) -> (i32, i32) {
    %c0_i32 = arith.constant 0 : i32
    %c0_i32_0 = arith.constant 0 : i32
    return %arg0, %c0_i32 : i32, i32
  }
}

</mosaic_0001>

<bundles_post_ra>
// kernel: tpu_custom_call.1
= control target key start
LH: loop header
LB: loop body
LE: loop exit
PB: predicated region body
PF: predicated region fallthrough
CT: control target
= control target key end

     0   :  { %v1542_v3 = vmov 0.0   ;;  %vm1543_vm0 = vmmov 0   ;;  %s2008_s0 = inlined_call_operand.vmem [shape: f32[128,4], index: 0, kind: input, shape index: {}]   ;;  %s2009_s1 = inlined_call_operand.vmem [shape: f32[4,128], index: 1, kind: input, shape index: {}]   ;;  %s2010_s2 = inlined_call_operand.vmem [shape: f32[4,128], index: 2, kind: input, shape index: {}]   ;;  %s2011_s3 = inlined_call_operand.hbm [shape: f32[4,128], index: 3, kind: output, shape index: {}]  }
   0x1   :  { %v33_v0 = vld [vmem:[%s2008_s0 + $0x78] sm:$0xff]  ;;  %v32_v1 = vld [vmem:[%s2008_s0 + $0x70] sm:$0xff]  ;;  %v31_v2 = vld [vmem:[%s2008_s0 + $0x68] sm:$0xff]  ;;  %1271 = vmatprep.subr.mxu0 %v1542_v3  ;;  %1306 = vmatprep.subr.mxu1 %v1542_v3 }
   0x2   :  { %v1575_v4 = vand.u32 4294901760, %v33_v0  ;;  %v1577_v5 = vand.u32 4294901760, %v32_v1  ;;  %v1579_v6 = vand.u32 4294901760, %v31_v2  ;;  %v30_v7 = vld [vmem:[%s2008_s0 + $0x60] sm:$0xff]  ;;  %v29_v8 = vld [vmem:[%s2008_s0 + $0x58] sm:$0xff]  ;;  %v28_v9 = vld [vmem:[%s2008_s0 + $0x50] sm:$0xff]  ;;  %1303 = vmatprep.mubr.msk.f32.mxu0 %vm1543_vm0, %v1542_v3  ;;  %1338 = vmatprep.mubr.msk.f32.mxu1 %vm1543_vm0, %v1542_v3 }
   0x3   :  { %v1591_v10 = vand.u32 4294901760, %v30_v7  ;;  %v1593_v11 = vand.u32 4294901760, %v29_v8  ;;  %v1595_v12 = vand.u32 4294901760, %v28_v9  ;;  %v27_v13 = vld [vmem:[%s2008_s0 + $0x48] sm:$0xff]  ;;  %v26_v14 = vld [vmem:[%s2008_s0 + $0x40] sm:$0xff]  ;;  %v25_v19 = vld [vmem:[%s2008_s0 + $0x38] sm:$0xff] }
   0x4   :  { %1272 = vmatpush3.msra.mxu0 %v1575_v4  ;;  %v1609_v15 = vsub.f32 %v33_v0, %v1575_v4  ;;  %v1612_v16 = vsub.f32 %v32_v1, %v1577_v5  ;;  %v1614_v17 = vand.u32 4294901760, %v27_v13  ;;  %v1617_v18 = vsub.f32 %v31_v2, %v1579_v6  ;;  %v24_v26 = vld [vmem:[%s2008_s0 + $0x30] sm:$0xff]  ;;  %v23_v34 = vld [vmem:[%s2008_s0 + $0x28] sm:$0xff] }
   0x5   :  { %1273 = vmatprep.subr.mxu0 %v1542_v3  ;;  %v1624_v20 = vsub.f32 %v30_v7, %v1591_v10  ;;  %v1627_v21 = vsub.f32 %v29_v8, %v1593_v11  ;;  %v1633_v25 = vand.u32 4294901760, %v26_v14  ;;  %v1640_v28 = vand.u32 4294901760, %v25_v19 }
   0x6   :  { %1274 = vmatpush3.msra.mxu0 %v1577_v5  ;;  %v128_v22 = vand.u32 4294901760, %v1609_v15  ;;  %v135_v23 = vand.u32 4294901760, %v1612_v16  ;;  %v142_v24 = vand.u32 4294901760, %v1617_v18  ;;  %v1644_v30 = vsub.f32 %v28_v9, %v1595_v12 }
   0x7   :  { %1275 = vmatprep.subr.mxu0 %v1542_v3  ;;  %v149_v27 = vand.u32 4294901760, %v1624_v20  ;;  %v156_v29 = vand.u32 4294901760, %v1627_v21  ;;  %v1660_v35 = vsub.f32 %v27_v13, %v1614_v17 }
   0x8   :  { %1276 = vmatpush3.msra.mxu0 %v1579_v6  ;;  %v129_v31 = vsub.f32 %v1609_v15, %v128_v22  ;;  %v136_v32 = vsub.f32 %v1612_v16, %v135_v23  ;;  %v143_v33 = vsub.f32 %v1617_v18, %v142_v24 }
   0x9   :  { %8 = vsyncpa [#allocation3], 0  ;;  %1277 = vmatprep.subr.mxu0 %v1542_v3  ;;  %v1663_v36 = vand.u32 4294901760, %v24_v26  ;;  %v150_v39 = vsub.f32 %v1624_v20, %v149_v27  ;;  %v163_v40 = vand.u32 4294901760, %v1644_v30  ;;  %v22_v41 = vld [vmem:[%s2008_s0 + $0x20] sm:$0xff]  ;;  %v1674_v42 = vand.u32 4294901760, %v23_v34 }
   0xa   :  { %1278 = vmatpush3.msra.mxu0 %v1591_v10  ;;  %v130_v37 = vand.u32 4294901760, %v129_v31  ;;  %v137_v38 = vand.u32 4294901760, %v136_v32  ;;  %v1677_v43 = vsub.f32 %v26_v14, %v1633_v25  ;;  %v144_v44 = vand.u32 4294901760, %v143_v33  ;;  %v15_v48 = vld [vmem:[%s2010_s2] sm:$0xf]  ;;  %v21_v50 = vld [vmem:[%s2008_s0 + $0x18] sm:$0xff] }
   0xb   :  { %1279 = vmatprep.subr.mxu0 %v1542_v3  ;;  %v157_v45 = vsub.f32 %v1627_v21, %v156_v29  ;;  %v170_v46 = vand.u32 4294901760, %v1660_v35  ;;  %v1685_v47 = vsub.f32 %v25_v19, %v1640_v28  ;;  %v1692_v49 = vand.u32 4294901760, %v22_v41  ;;  %v20_v54 = vld [vmem:[%s2008_s0 + $0x10] sm:$0xff]  ;;  %v19_v63 = vld [vmem:[%s2008_s0 + $0x8] sm:$0xff]  ;;  %v18_v8 = vld [vmem:[%s2008_s0] sm:$0xff] }
   0xc   :  { %1280 = vmatpush3.msra.mxu0 %v1593_v11  ;;  %1307 = vmatpush3.msra.mxu1 %v130_v37  ;;  %v151_v51 = vand.u32 4294901760, %v150_v39  ;;  %v164_v52 = vsub.f32 %v1644_v30, %v163_v40  ;;  %v177_v53 = vand.u32 4294901760, %v1677_v43  ;;  %v1706_v55 = vsub.f32 %v24_v26, %v1663_v36 }
   0xd   :  { %1281 = vmatprep.subr.mxu0 %v1542_v3  ;;  %1308 = vmatprep.subr.mxu1 %v1542_v3  ;;  %v184_v56 = vand.u32 4294901760, %v1685_v47  ;;  %v1711_v57 = vadd.f32 1e-15, %v15_v48  ;;  %v158_v58 = vand.u32 4294901760, %v157_v45  ;;  %v171_v59 = vsub.f32 %v1660_v35, %v170_v46 }
   0xe   :  { %1282 = vmatpush3.msra.mxu0 %v1595_v12  ;;  %1309 = vmatpush3.msra.mxu1 %v137_v38  ;;  %v1717_v60 = vand.u32 4294901760, %v21_v50  ;;  %v1720_v61 = vsub.f32 %v23_v34, %v1674_v42  ;;  %v1724_v62 = vand.u32 4294901760, %v20_v54  ;;  %v165_v1 = vand.u32 4294901760, %v164_v52 }
   0xf   :  { %1283 = vmatprep.subr.mxu0 %v1542_v3  ;;  %1310 = vmatprep.subr.mxu1 %v1542_v3  ;;  %v17_v0 = vmul.f32 %v1711_v57, %v1711_v57  ;;  %v178_v2 = vsub.f32 %v1677_v43, %v177_v53  ;;  %v191_v7 = vand.u32 4294901760, %v1706_v55  ;;  %v1740_v9 = vsub.f32 %v22_v41, %v1692_v49 }
  0x10   :  { %1284 = vmatpush3.msra.mxu0 %v1614_v17  ;;  %1311 = vmatpush3.msra.mxu1 %v144_v44  ;;  %v185_v13 = vsub.f32 %v1685_v47, %v184_v56  ;;  %v172_v19 = vand.u32 4294901760, %v171_v59  ;;  %v1750_v26 = vand.u32 4294901760, %v19_v63  ;;  %v198_v31 = vand.u32 4294901760, %v1720_v61 }
  0x11   :  { %1285 = vmatprep.subr.mxu0 %v1542_v3  ;;  %1312 = vmatprep.subr.mxu1 %v1542_v3  ;;  %v1747_v14 = vand.u32 4294901760, %v17_v0  ;;  %v1754_v32 = vsub.f32 %v21_v50, %v1717_v60  ;;  %v1758_v33 = vand.u32 4294901760, %v18_v8  ;;  %v179_v37 = vand.u32 4294901760, %v178_v2 }
  0x12   :  { %1286 = vmatpush3.msra.mxu0 %v1633_v25  ;;  %1313 = vmatpush3.msra.mxu1 %v151_v51  ;;  %v192_v38 = vsub.f32 %v1706_v55, %v191_v7  ;;  %v205_v39 = vand.u32 4294901760, %v1740_v9  ;;  %v1769_v41 = vsub.f32 %v20_v54, %v1724_v62  ;;  %v186_v44 = vand.u32 4294901760, %v185_v13 }
  0x13   :  { %1287 = vmatprep.subr.mxu0 %v1542_v3  ;;  %1314 = vmatprep.subr.mxu1 %v1542_v3  ;;  %v1761_v34 = vsub.f32 %v17_v0, %v1747_v14  ;;  %v199_v45 = vsub.f32 %v1720_v61, %v198_v31  ;;  %v212_v50 = vand.u32 4294901760, %v1754_v32  ;;  %v1780_v51 = vsub.f32 %v19_v63, %v1750_v26 }
  0x14   :  { %1288 = vmatpush3.msra.mxu0 %v1640_v28  ;;  %1315 = vmatpush3.msra.mxu1 %v158_v58  ;;  %v193_v52 = vand.u32 4294901760, %v192_v38  ;;  %v206_v54 = vsub.f32 %v1740_v9, %v205_v39  ;;  %v219_v58 = vand.u32 4294901760, %v1769_v41  ;;  %v1790_v59 = vsub.f32 %v18_v8, %v1758_v33 }
  0x15   :  { %1289 = vmatprep.subr.mxu0 %v1542_v3  ;;  %1316 = vmatprep.subr.mxu1 %v1542_v3  ;;  %v117_v48 = vand.u32 4294901760, %v1761_v34  ;;  %v200_v63 = vand.u32 4294901760, %v199_v45  ;;  %v226_v2 = vand.u32 4294901760, %v1780_v51  ;;  %vm691_vm1 = vcmask 1043456  }
  0x16   :  { %1290 = vmatpush3.msra.mxu0 %v1663_v36  ;;  %1317 = vmatpush3.msra.mxu1 %v165_v1  ;;  %v213_v1 = vsub.f32 %v1754_v32, %v212_v50  ;;  %v207_v8 = vand.u32 4294901760, %v206_v54  ;;  %v220_v13 = vsub.f32 %v1769_v41, %v219_v58  ;;  %vm687_vm4 = vcmask 31744  }
  0x17   :  { %1291 = vmatprep.subr.mxu0 %v1542_v3  ;;  %1318 = vmatprep.subr.mxu1 %v1542_v3  ;;  %v118_v0 = vsub.f32 %v1761_v34, %v117_v48 }
  0x18   :  { %1292 = vmatpush3.msra.mxu0 %v1674_v42  ;;  %1319 = vmatpush3.msra.mxu1 %v172_v19  ;;  %v233_v19 = vand.u32 4294901760, %v1790_v59  ;;  %v214_v38 = vand.u32 4294901760, %v213_v1  ;;  %v221_v45 = vand.u32 4294901760, %v220_v13 }
  0x19   :  { %1293 = vmatprep.subr.mxu0 %v1542_v3  ;;  %1320 = vmatprep.subr.mxu1 %v1542_v3 }
  0x1a   :  { %1294 = vmatpush3.msra.mxu0 %v1692_v49  ;;  %1321 = vmatpush3.msra.mxu1 %v179_v37  ;;  %v119_v37 = vand.u32 4294901760, %v118_v0 }
  0x1b   :  { %1295 = vmatprep.subr.mxu0 %v1542_v3  ;;  %1322 = vmatprep.subr.mxu1 %v1542_v3 }
  0x1c   :  { %1296 = vmatpush3.msra.mxu0 %v1717_v60  ;;  %1323 = vmatpush3.msra.mxu1 %v186_v44  ;;  %v227_v44 = vsub.f32 %v1780_v51, %v226_v2 }
  0x1d   :  { %1297 = vmatprep.subr.mxu0 %v1542_v3  ;;  %1324 = vmatprep.subr.mxu1 %v1542_v3 }
  0x1e   :  { %1298 = vmatpush3.msra.mxu0 %v1724_v62  ;;  %1325 = vmatpush3.msra.mxu1 %v193_v52  ;;  %v234_v52 = vsub.f32 %v1790_v59, %v233_v19  ;;  %v228_v54 = vand.u32 4294901760, %v227_v44 }
  0x1f   :  { %1299 = vmatprep.subr.mxu0 %v1542_v3  ;;  %1326 = vmatprep.subr.mxu1 %v1542_v3 }
  0x20   :  { %1300 = vmatpush3.msra.mxu0 %v1750_v26  ;;  %1327 = vmatpush3.msra.mxu1 %v200_v63  ;;  %v235_v63 = vand.u32 4294901760, %v234_v52 }
  0x21   :  { %1301 = vmatprep.subr.mxu0 %v1542_v3  ;;  %1328 = vmatprep.subr.mxu1 %v1542_v3 }
  0x22   :  { %1302 = vmatpush3.msra.mxu0 %v1758_v33  ;;  %1329 = vmatpush3.msra.mxu1 %v207_v8 }
  0x23   :  { %1330 = vmatprep.subr.mxu1 %v1542_v3  ;;  %1341 = vmatprep.subr.mxu0 %v1542_v3 }
  0x24   :  { %1304 = vmatmul.mubr.f32.vlgmr.msra.gmra.mxu0 %v119_v37  ;;  %1331 = vmatpush3.msra.mxu1 %v214_v38 }
  0x25   :  { %1342 = vmatpush3.msra.mxu0 %v1609_v15  ;;  %1332 = vmatprep.subr.mxu1 %v1542_v3 }
  0x26   :  { %1343 = vmatprep.subr.mxu0 %v1542_v3  ;;  %1333 = vmatpush3.msra.mxu1 %v221_v45 }
  0x27   :  { %1344 = vmatpush3.msra.mxu0 %v1612_v16  ;;  %1334 = vmatprep.subr.mxu1 %v1542_v3 }
  0x28   :  { %1345 = vmatprep.subr.mxu0 %v1542_v3  ;;  %1335 = vmatpush3.msra.mxu1 %v228_v54 }
  0x29   :  { %1346 = vmatpush3.msra.mxu0 %v1617_v18  ;;  %1336 = vmatprep.subr.mxu1 %v1542_v3 }
  0x2a   :  { %1347 = vmatprep.subr.mxu0 %v1542_v3  ;;  %1337 = vmatpush3.msra.mxu1 %v235_v63 }
  0x2b   :  { %1348 = vmatpush3.msra.mxu0 %v1624_v20  ;;  %1339 = vmatmul.mubr.f32.vlgmr.msra.gmra.mxu1 %v1747_v14 }
  0x2c   :  { %1349 = vmatprep.subr.mxu0 %v1542_v3  ;;  %1376 = vmatprep.subr.mxu1 %v1542_v3 }
  0x2d   :  { %1350 = vmatpush3.msra.mxu0 %v1627_v21  ;;  %1377 = vmatpush3.msra.mxu1 %v1575_v4 }
  0x2e   :  { %1351 = vmatprep.subr.mxu0 %v1542_v3  ;;  %1378 = vmatprep.subr.mxu1 %v1542_v3 }
  0x2f   :  { %1352 = vmatpush3.msra.mxu0 %v1644_v30  ;;  %1379 = vmatpush3.msra.mxu1 %v1577_v5 }
  0x30   :  { %1353 = vmatprep.subr.mxu0 %v1542_v3  ;;  %1380 = vmatprep.subr.mxu1 %v1542_v3 }
  0x31   :  { %1354 = vmatpush3.msra.mxu0 %v1660_v35  ;;  %1381 = vmatpush3.msra.mxu1 %v1579_v6 }
  0x32   :  { %1355 = vmatprep.subr.mxu0 %v1542_v3  ;;  %1382 = vmatprep.subr.mxu1 %v1542_v3 }
  0x33   :  { %1356 = vmatpush3.msra.mxu0 %v1677_v43  ;;  %1383 = vmatpush3.msra.mxu1 %v1591_v10 }
  0x34   :  { %1357 = vmatprep.subr.mxu0 %v1542_v3  ;;  %1384 = vmatprep.subr.mxu1 %v1542_v3 }
  0x35   :  { %1358 = vmatpush3.msra.mxu0 %v1685_v47  ;;  %1385 = vmatpush3.msra.mxu1 %v1593_v11 }
  0x36   :  { %1359 = vmatprep.subr.mxu0 %v1542_v3  ;;  %1386 = vmatprep.subr.mxu1 %v1542_v3 }
  0x37   :  { %1360 = vmatpush3.msra.mxu0 %v1706_v55  ;;  %1387 = vmatpush3.msra.mxu1 %v1595_v12 }
  0x38   :  { %1361 = vmatprep.subr.mxu0 %v1542_v3  ;;  %1388 = vmatprep.subr.mxu1 %v1542_v3 }
  0x39   :  { %1362 = vmatpush3.msra.mxu0 %v1720_v61  ;;  %1389 = vmatpush3.msra.mxu1 %v1614_v17 }
  0x3a   :  { %1363 = vmatprep.subr.mxu0 %v1542_v3  ;;  %1390 = vmatprep.subr.mxu1 %v1542_v3 }
  0x3b   :  { %1364 = vmatpush3.msra.mxu0 %v1740_v9  ;;  %1391 = vmatpush3.msra.mxu1 %v1633_v25 }
  0x3c   :  { %1365 = vmatprep.subr.mxu0 %v1542_v3  ;;  %1392 = vmatprep.subr.mxu1 %v1542_v3 }
  0x3d   :  { %1366 = vmatpush3.msra.mxu0 %v1754_v32  ;;  %1393 = vmatpush3.msra.mxu1 %v1640_v28 }
  0x3e   :  { %1367 = vmatprep.subr.mxu0 %v1542_v3  ;;  %1394 = vmatprep.subr.mxu1 %v1542_v3 }
  0x3f   :  { %1368 = vmatpush3.msra.mxu0 %v1769_v41  ;;  %1395 = vmatpush3.msra.mxu1 %v1663_v36 }
  0x40   :  { %1369 = vmatprep.subr.mxu0 %v1542_v3  ;;  %1396 = vmatprep.subr.mxu1 %v1542_v3 }
  0x41   :  { %1370 = vmatpush3.msra.mxu0 %v1780_v51  ;;  %1397 = vmatpush3.msra.mxu1 %v1674_v42 }
  0x42   :  { %1371 = vmatprep.subr.mxu0 %v1542_v3  ;;  %1398 = vmatprep.subr.mxu1 %v1542_v3 }
  0x43   :  { %1372 = vmatpush3.msra.mxu0 %v1790_v59  ;;  %1373 = vmatprep.mubr.msk.f32.mxu0 %vm1543_vm0, %v1542_v3 }
  0x44   :  { %1399 = vmatpush3.msra.mxu1 %v1692_v49  ;;  %1374 = vmatmul.mubr.f32.vlgmr.msra.gmra.mxu0 %v1761_v34 }
  0x45   :  { %1400 = vmatprep.subr.mxu1 %v1542_v3  ;;  %1411 = vmatprep.subr.mxu0 %v1542_v3 }
  0x46   :  { %1401 = vmatpush3.msra.mxu1 %v1717_v60  ;;  %1412 = vmatpush3.msra.mxu0 %v128_v22 }
  0x47   :  { %1402 = vmatprep.subr.mxu1 %v1542_v3  ;;  %1413 = vmatprep.subr.mxu0 %v1542_v3 }
  0x48   :  { %1403 = vmatpush3.msra.mxu1 %v1724_v62  ;;  %1414 = vmatpush3.msra.mxu0 %v135_v23 }
  0x49   :  { %1404 = vmatprep.subr.mxu1 %v1542_v3  ;;  %1415 = vmatprep.subr.mxu0 %v1542_v3 }
  0x4a   :  { %1405 = vmatpush3.msra.mxu1 %v1750_v26  ;;  %1416 = vmatpush3.msra.mxu0 %v142_v24 }
  0x4b   :  { %1406 = vmatprep.subr.mxu1 %v1542_v3  ;;  %1417 = vmatprep.subr.mxu0 %v1542_v3 }
  0x4c   :  { %1407 = vmatpush3.msra.mxu1 %v1758_v33  ;;  %1408 = vmatprep.mubr.msk.f32.mxu1 %vm1543_vm0, %v1542_v3 }
  0x4d   :  { %1418 = vmatpush3.msra.mxu0 %v149_v27  ;;  %1409 = vmatmul.mubr.f32.vlgmr.msra.gmra.mxu1 %v117_v48 }
  0x4e   :  { %1419 = vmatprep.subr.mxu0 %v1542_v3  ;;  %1446 = vmatprep.subr.mxu1 %v1542_v3 }
  0x4f   :  { %1420 = vmatpush3.msra.mxu0 %v156_v29  ;;  %1447 = vmatpush3.msra.mxu1 %v1575_v4  ;;  %v686_v4 = vld [vmem:[%s2009_s1] sm:$0xf]  ;;  %s1544_s1 = smov [#allocation2]  }
  0x50   :  { %1421 = vmatprep.subr.mxu0 %v1542_v3  ;;  %1448 = vmatprep.subr.mxu1 %v1542_v3  ;;  %s1149_s19 = sshll.u32 %s1544_s1, 4  ;;  %s1150_s19 = int_to_ptr.vmem [resolvable:$true] %s1149_s19 }
  0x51   :  { %1422 = vmatpush3.msra.mxu0 %v163_v40  ;;  %1449 = vmatpush3.msra.mxu1 %v1577_v5  ;;  %v693_v5 = vsel %vm691_vm1, %v686_v4, 0  ;;  %s1520_s20 = scalar_lea.vmem %s1150_s19, 64  ;;  %p1525_p1 = scmp.lt.s32.totalorder %s1150_s19, %s1150_s19 }
  0x52   :  { %1423 = vmatprep.subr.mxu0 %v1542_v3  ;;  %1450 = vmatprep.subr.mxu1 %v1542_v3  ;;  %p1521_p0 = scmp.ne.s32.totalorder %s1150_s19, %s1520_s20  ;;  %p1526_p2 = scmp.lt.s32.totalorder %s1520_s20, %s1520_s20 }
  0x53   :  { %1424 = vmatpush3.msra.mxu0 %v170_v46  ;;  %1451 = vmatpush3.msra.mxu1 %v1579_v6  ;;  %v726_v6 = vand.u32 4294901760, %v693_v5 }
  0x54   :  { %1425 = vmatprep.subr.mxu0 %v1542_v3  ;;  %1452 = vmatprep.subr.mxu1 %v1542_v3  ;;  %p1527_p3 = por %p1526_p2, %p1525_p1 }
  0x55   :  { %1426 = vmatpush3.msra.mxu0 %v177_v53  ;;  %1453 = vmatpush3.msra.mxu1 %v1591_v10  ;;  %v803_v10 = vsub.f32 %v693_v5, %v726_v6 }
  0x56   :  { %1427 = vmatprep.subr.mxu0 %v1542_v3  ;;  %1454 = vmatprep.subr.mxu1 %v1542_v3  ;;  %p1528_p4 = pnand %p1527_p3, %p1521_p0 }
  0x57   :  { %1428 = vmatpush3.msra.mxu0 %v184_v56  ;;  %1455 = vmatpush3.msra.mxu1 %v1593_v11  ;;  %v804_v11 = vand.u32 4294901760, %v803_v10 }
  0x58   :  { %1429 = vmatprep.subr.mxu0 %v1542_v3  ;;  %1456 = vmatprep.subr.mxu1 %v1542_v3 }
  0x59   :  { %1430 = vmatpush3.msra.mxu0 %v191_v7  ;;  %1457 = vmatpush3.msra.mxu1 %v1595_v12  ;;  %v805_v12 = vsub.f32 %v803_v10, %v804_v11 }
  0x5a   :  { %1431 = vmatprep.subr.mxu0 %v1542_v3  ;;  %1458 = vmatprep.subr.mxu1 %v1542_v3 }
  0x5b   :  { %1432 = vmatpush3.msra.mxu0 %v198_v31  ;;  %1459 = vmatpush3.msra.mxu1 %v1614_v17  ;;  %v806_v15 = vand.u32 4294901760, %v805_v12 }
  0x5c   :  { %1433 = vmatprep.subr.mxu0 %v1542_v3  ;;  %1460 = vmatprep.subr.mxu1 %v1542_v3 }
  0x5d   :  { %1434 = vmatpush3.msra.mxu0 %v205_v39  ;;  %1461 = vmatpush3.msra.mxu1 %v1633_v25 }
  0x5e   :  { %1435 = vmatprep.subr.mxu0 %v1542_v3  ;;  %1462 = vmatprep.subr.mxu1 %v1542_v3 }
  0x5f   :  { %1436 = vmatpush3.msra.mxu0 %v212_v50  ;;  %1463 = vmatpush3.msra.mxu1 %v1640_v28 }
  0x60   :  { %1437 = vmatprep.subr.mxu0 %v1542_v3  ;;  %1464 = vmatprep.subr.mxu1 %v1542_v3 }
  0x61   :  { %1438 = vmatpush3.msra.mxu0 %v219_v58  ;;  %1465 = vmatpush3.msra.mxu1 %v1663_v36 }
  0x62   :  { %1439 = vmatprep.subr.mxu0 %v1542_v3  ;;  %1466 = vmatprep.subr.mxu1 %v1542_v3 }
  0x63   :  { %1440 = vmatpush3.msra.mxu0 %v226_v2  ;;  %1467 = vmatpush3.msra.mxu1 %v1674_v42 }
  0x64   :  { %1441 = vmatprep.subr.mxu0 %v1542_v3  ;;  %1468 = vmatprep.subr.mxu1 %v1542_v3 }
  0x65   :  { %1442 = vmatpush3.msra.mxu0 %v233_v19  ;;  %1443 = vmatprep.mubr.msk.f32.mxu0 %vm1543_vm0, %v1542_v3 }
  0x66   :  { %1469 = vmatpush3.msra.mxu1 %v1692_v49  ;;  %1444 = vmatmul.mubr.f32.vlgmr.msra.gmra.mxu0 %v1747_v14 }
  0x67   :  { %1470 = vmatprep.subr.mxu1 %v1542_v3  ;;  %1478 = vmatprep.mubr.msk.f32.mxu1 %vm1543_vm0, %v1542_v3 }
  0x68   :  { %1471 = vmatpush3.msra.mxu1 %v1717_v60  ;;  %1481 = vmatprep.subr.mxu0 %v1542_v3 }
  0x69   :  { %1472 = vmatprep.subr.mxu1 %v1542_v3  ;;  %1483 = vmatprep.mubr.msk.f32.mxu0 %vm1543_vm0, %v1542_v3 }
  0x6a   :  { %1473 = vmatpush3.msra.mxu1 %v1724_v62  ;;  %1482 = vmatpush3.msra.mxu0 %v726_v6 }
  0x6b   :  { %1474 = vmatprep.subr.mxu1 %v1542_v3  ;;  %1491 = vmatprep.subr.mxu0 %v1542_v3 }
  0x6c   :  { %1475 = vmatpush3.msra.mxu1 %v1750_v26 }
  0x6d   :  { %1476 = vmatprep.subr.mxu1 %v1542_v3 }
  0x6e   :  { %1477 = vmatpush3.msra.mxu1 %v1758_v33 }
  0x6f   :  { %1479 = vmatmul.mubr.f32.vlgmr.msra.gmra.mxu1 %v1747_v14  ;;  %1486 = vmatprep.subr.mxu1 %v1542_v3 }
  0x70   :  { %1488 = vmatprep.mubr.msk.f32.mxu1 %vm1543_vm0, %v1542_v3  ;;  %1487 = vmatpush3.msra.mxu1 %v806_v15 }
  0x71   :  { %1496 = vmatprep.subr.mxu1 %v1542_v3 }
  0xe4   :  { %v121_v16 = vpop.f32.mrf.mxu0 }
  0xe6   :  { %v1305_v17 = vpop.f32.mrf.mxu0 }
  0xeb   :  { %v272_v18 = vpop.f32.mrf.mxu1 }
  0xec   :  { %v273_v27 = vadd.f32 %v272_v18, %v121_v16 }
  0xed   :  { %v1340_v20 = vpop.f32.mrf.mxu1 }
 0x104   :  { %v376_v21 = vpop.f32.mrf.mxu0 }
 0x105   :  { %v377_v29 = vadd.f32 %v376_v21, %v273_v27 }
 0x106   :  { %v1375_v22 = vpop.f32.mrf.mxu0 }
 0x10d   :  { %v465_v23 = vpop.f32.mrf.mxu1 }
 0x10e   :  { %v466_v30 = vadd.f32 %v465_v23, %v377_v29 }
 0x10f   :  { %v1410_v24 = vpop.f32.mrf.mxu1 }
 0x126   :  { %v584_v25 = vpop.f32.mrf.mxu0 }
 0x127   :  { %v585_v35 = vadd.f32 %v584_v25, %v466_v30 }
 0x128   :  { %v1445_v28 = vpop.f32.mrf.mxu0 }
 0x12f   :  { %v671_v36 = vpop.f32.mrf.mxu1 }
 0x130   :  { %v672_v40 = vadd.f32 %v671_v36, %v585_v35 }
 0x131   :  { %v1480_v42 = vpop.f32.mrf.mxu1 }
 0x132   :  { %1514 = vrsqrt.f32 %v672_v40  ;;  %vm677_vm2 = vcmp.eq.f32.partialorder %v672_v40, inf  ;;  %v680_v47 = vand.u32 2147483648, %v672_v40  ;;  %vm679_vm3 = vcmp.eq.f32.partialorder %v672_v40, 0.0 }
 0x13f   :  { %v1515_v43 = vpop.eup %1514 }
 0x140   :  { %v676_v46 = vmul.f32 %v1515_v43, %v672_v40 }
 0x142   :  { %v678_v49 = vsel %vm677_vm2, %v672_v40, %v676_v46 }
 0x143   :  { %v681_v53 = vsel %vm679_vm3, %v680_v47, %v678_v49 }
 0x144   :  { %v682_v55 = vmax.f32 %v681_v53, 1e-30 }
 0x146   :  { %1516 = vtanh.f32 %v682_v55 }
 0x147   :  { %1518 = vrcp.f32 %v682_v55 }
 0x153   :  { %v1517_v56 = vpop.eup %1516 }
 0x154   :  { %v1519_v60 = vpop.eup %1518 }
 0x155   :  { %v685_v61 = vmul.f32 %v1519_v60, %v1517_v56 }
 0x157   :  { %v689_v62 = vsel %vm687_vm4, %v685_v61, 0 }
 0x158   :  { %v761_v7 = vand.u32 4294901760, %v689_v62 }
 0x15a   :  { %v762_v9 = vsub.f32 %v689_v62, %v761_v7  ;;  %1489 = vmatmul.mubr.f32.vlgmr.msra.gmra.mxu1 %v761_v7 }
 0x15b   :  { %1497 = vmatpush3.msra.mxu1 %v726_v6  ;;  %1498 = vmatprep.mubr.msk.f32.mxu1 %vm1543_vm0, %v1542_v3 }
 0x15c   :  { %v763_v14 = vand.u32 4294901760, %v762_v9  ;;  %1506 = vmatprep.subr.mxu1 %v1542_v3 }
 0x15e   :  { %1499 = vmatmul.mubr.f32.vlgmr.msra.gmra.mxu1 %v763_v14  ;;  %v764_v26 = vsub.f32 %v762_v9, %v763_v14 }
 0x15f   :  { %1507 = vmatpush3.msra.mxu1 %v726_v6  ;;  %1508 = vmatprep.mubr.msk.f32.mxu1 %vm1543_vm0, %v1542_v3 }
 0x160   :  { %v765_v31 = vand.u32 4294901760, %v764_v26 }
 0x162   :  { %1484 = vmatmul.mubr.f32.vlgmr.msra.gmra.mxu0 %v765_v31  ;;  %1509 = vmatmul.mubr.f32.vlgmr.msra.gmra.mxu1 %v761_v7 }
 0x163   :  { %1492 = vmatpush3.msra.mxu0 %v803_v10  ;;  %1493 = vmatprep.mubr.msk.f32.mxu0 %vm1543_vm0, %v1542_v3 }
 0x164   :  { %1501 = vmatprep.subr.mxu0 %v1542_v3 }
 0x166   :  { %1494 = vmatmul.mubr.f32.vlgmr.msra.gmra.mxu0 %v762_v9 }
 0x167   :  { %1502 = vmatpush3.msra.mxu0 %v804_v11  ;;  %1503 = vmatprep.mubr.msk.f32.mxu0 %vm1543_vm0, %v1542_v3 }
 0x16a   :  { %1504 = vmatmul.mubr.f32.vlgmr.msra.gmra.mxu0 %v761_v7 }
 0x21a   :  { %v843_v32 = vpop.f32.mrf.mxu1 }
 0x21c   :  { %v1490_v33 = vpop.f32.mrf.mxu1 }
 0x21e   :  { %v991_v34 = vpop.f32.mrf.mxu1 }
 0x220   :  { %v1500_v39 = vpop.f32.mrf.mxu1 }
 0x222   :  { %v767_v41 = vpop.f32.mrf.mxu0  ;;  %v1137_v48 = vpop.f32.mrf.mxu1 }
 0x223   :  { %v844_v58 = vadd.f32 %v843_v32, %v767_v41 }
 0x224   :  { %v1485_v50 = vpop.f32.mrf.mxu0  ;;  %v1510_v51 = vpop.f32.mrf.mxu1 }
 0x226   :  { %v917_v59 = vpop.f32.mrf.mxu0 }
 0x227   :  { %v918_v0 = vadd.f32 %v917_v59, %v844_v58 }
 0x228   :  { %v1495_v1 = vpop.f32.mrf.mxu0 }
 0x229   :  { %v992_v2 = vadd.f32 %v991_v34, %v918_v0 }
 0x22a   :  { %v1065_v8 = vpop.f32.mrf.mxu0 }
 0x22b   :  { %v1066_v13 = vadd.f32 %v1065_v8, %v992_v2 }
 0x22c   :  { %v1505_v19 = vpop.f32.mrf.mxu0 }
 0x22d   :  { %v1138_v3 = vadd.f32 %v1137_v48, %v1066_v13 }
 0x22f   :  { %v1141_v37 = vmul.f32 %v1138_v3, %v1711_v57 }
 0x231   :  { %1142 = vst [vmem:[#allocation2] sm:$0xf] %v1141_v37 }
 0x232   :  { %1531 = shalt.err (!%p1528_p4)
}
 0x233   :  { %1152 = dma.vmem_to_hbm [thread:$0]  %s1150_s19, 64, %s2011_s3, [#allocation3]  }
 0x234   :  { %1540 = dma.done.wait [#allocation3], 64  }
 0x235   :  { %1541 = vsyncadd [#allocation3], 4294967232 }
 0x236   :  { %1156 = vsyncpa [#allocation3], 1 }

</bundles_post_ra>
